<compile_context>
chip_gen: v5e
topology: v5e:2x2
jax: 0.10.0
libtpu: 0.0.40
codegen_flags: <defaults>
</compile_context>

<pallas_src>
import jax
import jax.numpy as jnp
from jax.experimental import pallas as pl
from jax.experimental.pallas import tpu as pltpu


def _closed_loop_kernel(x_ref, w_ref, c_ref, o_ref):
    # x1 = x @ W + c   -- single MXU push, accumulate in f32, one VPU add.
    acc = jnp.dot(x_ref[...], w_ref[...], preferred_element_type=jnp.float32)
    o_ref[...] = (acc + c_ref[...]).astype(o_ref.dtype)


def closed_loop_dynamics(t, x, K, b_k, A, B):
    """Closed-loop step: u = x@K^T + b_k ; x1 = x@A^T + u@B^T.

    Shapes: x (batch, n); K (m, n); b_k (m,); A (n, n); B (n, m) -> (batch, n).
    """
    del t  # linear LQR controller / LTI dynamics are time-invariant (kept for API fidelity)
    batch, n = x.shape
    itemsize = jnp.dtype(x.dtype).itemsize

    # --- Exact fold of the controller into the dynamics (static matrices) ---
    M_fold = (A + B @ K).T                    # (n, n), laid out for plain x @ M
    c_fold = (b_k @ B.T).reshape(1, n)        # (1, n) constant bias

    # --- Lane packing: concat P consecutive rows -> one lane-dense packed row ---
    P = 1
    for cand in (8, 4, 2):
        if batch % cand == 0:
            P = cand
            break
    # TODO(synk): odd batches fall back to the 32-lane layout (correct, just
    # fewer lanes used); a tail-split would recover lane density there too.
    L = n * P
    rows = batch // P
    xp = x.reshape(rows, L)                                     # contiguous, no copy
    Wp = jnp.kron(jnp.eye(P, dtype=M_fold.dtype), M_fold)       # (L, L) block-diag
    cp = jnp.tile(c_fold, (1, P))                               # (1, L)

    # --- Batch tiling: target ~2 MiB per x block ---
    target_block_bytes = 2 << 20
    tb = max(512, (target_block_bytes // (L * itemsize)) // 8 * 8)
    if rows <= tb:
        if rows >= 16:
            # Split into >=2 grid steps so v7x's two TensorCores both get work.
            TB = ((pl.cdiv(rows, 2) + 7) // 8) * 8
        else:
            TB = rows                       # single full-extent block
    else:
        TB = tb
    grid_b = pl.cdiv(rows, TB)              # partial last block: no pad, no slice

    grid_spec = pltpu.PrefetchScalarGridSpec(
        num_scalar_prefetch=0,
        grid=(grid_b,),
        in_specs=[
            pl.BlockSpec((TB, L), lambda i: (i, 0)),   # x streams per grid step
            pl.BlockSpec((L, L), lambda i: (0, 0)),    # folded weight: VMEM-resident
            pl.BlockSpec((1, L), lambda i: (0, 0)),    # folded bias:   VMEM-resident
        ],
        out_specs=pl.BlockSpec((TB, L), lambda i: (i, 0)),
    )

    out_p = pl.pallas_call(
        _closed_loop_kernel,
        out_shape=jax.ShapeDtypeStruct((rows, L), x.dtype),
        grid_spec=grid_spec,
        compiler_params=pltpu.CompilerParams(
            dimension_semantics=("parallel",),   # batch grid splits across v7x TCs
            vmem_limit_bytes=32 * 1024 * 1024,   # headroom vs v5e's 16 MiB scoped default
        ),
    )(xp, Wp, cp)

    return out_p.reshape(batch, n)


def closed_loop_dynamics_ref(t, x, K, b_k, A, B):
    del t
    u = x @ K.T + b_k
    return x @ A.T + u @ B.T


if __name__ == "__main__":
    key = jax.random.PRNGKey(0)
    kx, kK, kb, kA, kB, kx2 = jax.random.split(key, 6)

    batch, n, m = 8, 32, 16   # batch, state_dim, control_dim
    x = jax.random.normal(kx, (batch, n), dtype=jnp.float32)
    K = 0.1 * jax.random.normal(kK, (m, n), dtype=jnp.float32)   # feedback gain
    b_k = 0.01 * jax.random.normal(kb, (m,), dtype=jnp.float32)  # controller bias
    A = 0.1 * jax.random.normal(kA, (n, n), dtype=jnp.float32)   # system matrix
    B = 0.1 * jax.random.normal(kB, (n, m), dtype=jnp.float32)   # input matrix
    t = jnp.float32(0.5)                                         # scalar time

    out = jax.block_until_ready(closed_loop_dynamics(t, x, K, b_k, A, B))
    ref = closed_loop_dynamics_ref(t, x, K, b_k, A, B)
    assert out.shape == (batch, n)
    assert jnp.allclose(out, ref, atol=1e-5, rtol=1e-5)

    # Exercise the pad-free partial-last-block path and the >=2 grid-step split.
    batch2 = 100
    x2 = jax.random.normal(kx2, (batch2, n), dtype=jnp.float32)
    out2 = jax.block_until_ready(closed_loop_dynamics(t, x2, K, b_k, A, B))
    ref2 = closed_loop_dynamics_ref(t, x2, K, b_k, A, B)
    assert out2.shape == (batch2, n)
    assert jnp.allclose(out2, ref2, atol=1e-5, rtol=1e-5)

    print("KERNEL_OK")
</pallas_src>

<mosaic_0001>
module attributes {stable_mosaic.version = 11 : i64} {
  func.func @_closed_loop_kernel(%arg0: i32, %arg1: memref<1x256xf32, #tpu.memory_space<vmem>>, %arg2: memref<256x256xf32, #tpu.memory_space<vmem>>, %arg3: memref<1x256xf32, #tpu.memory_space<vmem>>, %arg4: memref<1x256xf32, #tpu.memory_space<vmem>>) attributes {dimension_semantics = [#tpu.dimension_semantics<parallel>], iteration_bounds = array<i64: 1>, scalar_prefetch = 0 : i64, scratch_operands = 0 : i64, tpu.core_type = #tpu.core_type<tc>, window_params = [{transform_indices = @transform_0, window_bounds = array<i64: 1, 256>}, {pipeline_mode = #tpu.pipeline_mode<synchronous>, transform_indices = @transform_1, window_bounds = array<i64: 256, 256>}, {pipeline_mode = #tpu.pipeline_mode<synchronous>, transform_indices = @transform_2, window_bounds = array<i64: 1, 256>}, {transform_indices = @transform_3, window_bounds = array<i64: 1, 256>}]} {
    %c0 = arith.constant 0 : index
    %c0_0 = arith.constant 0 : index
    %0 = vector.load %arg1[%c0, %c0_0] : memref<1x256xf32, #tpu.memory_space<vmem>>, vector<1x256xf32>
    %c0_1 = arith.constant 0 : index
    %c0_2 = arith.constant 0 : index
    %1 = vector.load %arg2[%c0_1, %c0_2] : memref<256x256xf32, #tpu.memory_space<vmem>>, vector<256x256xf32>
    %cst = arith.constant dense<0.000000e+00> : vector<1x256xf32>
    %2 = tpu.matmul %0, %1, %cst {dimension_numbers = #tpu.dot_dimension_numbers<[1], [0], [0], [1], [0, 0, 1, 1], [], []>} : vector<1x256xf32>, vector<256x256xf32>, vector<1x256xf32> -> vector<1x256xf32>
    %c0_3 = arith.constant 0 : index
    %c0_4 = arith.constant 0 : index
    %3 = vector.load %arg3[%c0_3, %c0_4] : memref<1x256xf32, #tpu.memory_space<vmem>>, vector<1x256xf32>
    %4 = arith.addf %2, %3 : vector<1x256xf32>
    %c0_5 = arith.constant 0 : index
    %c0_6 = arith.constant 0 : index
    %5 = vector.load %arg4[%c0_5, %c0_6] : memref<1x256xf32, #tpu.memory_space<vmem>>, vector<1x256xf32>
    tpu.vector_store %arg4[%c0_5, %c0_6], %4 {strides = array<i32>} : memref<1x256xf32, #tpu.memory_space<vmem>>, vector<1x256xf32>,
    return
  }
  func.func @transform_0(%arg0: i32) -> (i32, i32) {
    %c0_i32 = arith.constant 0 : i32
    %c0_i32_0 = arith.constant 0 : i32
    return %arg0, %c0_i32 : i32, i32
  }
  func.func @transform_1(%arg0: i32) -> (i32, i32) {
    %c0_i32 = arith.constant 0 : i32
    %c0_i32_0 = arith.constant 0 : i32
    %c0_i32_1 = arith.constant 0 : i32
    return %c0_i32, %c0_i32_0 : i32, i32
  }
  func.func @transform_2(%arg0: i32) -> (i32, i32) {
    %c0_i32 = arith.constant 0 : i32
    %c0_i32_0 = arith.constant 0 : i32
    %c0_i32_1 = arith.constant 0 : i32
    return %c0_i32, %c0_i32_0 : i32, i32
  }
  func.func @transform_3(%arg0: i32) -> (i32, i32) {
    %c0_i32 = arith.constant 0 : i32
    %c0_i32_0 = arith.constant 0 : i32
    return %arg0, %c0_i32 : i32, i32
  }
}

</mosaic_0001>

<bundles_post_ra>
// kernel: tpu_custom_call.1
= control target key start
LH: loop header
LB: loop body
LE: loop exit
PB: predicated region body
PF: predicated region fallthrough
CT: control target
= control target key end

     0   :  { %8 = vsyncpa [#allocation3], 0  ;;  %s389_s0 = inlined_call_operand.hbm [shape: f32[1,256], index: 0, kind: input, shape index: {}]   ;;  %s390_s1 = inlined_call_operand.hbm [shape: f32[256,256], index: 1, kind: input, shape index: {}]   ;;  %s391_s2 = inlined_call_operand.hbm [shape: f32[1,256], index: 2, kind: input, shape index: {}]   ;;  %s392_s3 = inlined_call_operand.hbm [shape: f32[1,256], index: 3, kind: output, shape index: {}]  }
   0x1   :  { %9 = vsyncpa [#allocation6], 0  ;;  %s26_s14 = sshll.u32 %s390_s1, 4  ;;  %s27_s14 = int_to_ptr.hbm [resolvable:$true] %s26_s14 }
   0x2   :  { %10 = vsyncpa [#allocation4], 0  ;;  %s351_s15 = smov [#allocation5]   ;;  %s16_s19 = sshll.u32 %s389_s0, 4  ;;  %s17_s19 = int_to_ptr.hbm [resolvable:$true] %s16_s19 }
   0x3   :  { %s28_s16 = sshll.u32 %s351_s15, 4  ;;  %s352_s20 = smov 256   ;;  %s29_s16 = int_to_ptr.vmem [resolvable:$true] %s28_s16 }
   0x4   :  { %s353_s21 = smov 16   ;;  %s354_s22 = smov [#allocation2]  }
   0x5   :  { %34 = dma.hbm_to_vmem [thread:$0]  %s27_s14, 8192, %s29_s16, [#allocation6], %s352_s20, %s352_s20, %s353_s21  }
   0x6   :  { %s18_s23 = sshll.u32 %s354_s22, 4  ;;  %s40_s26 = sshll.u32 %s391_s2, 4  ;;  %s19_s23 = int_to_ptr.vmem [resolvable:$true] %s18_s23  ;;  %s41_s26 = int_to_ptr.hbm [resolvable:$true] %s40_s26 }
   0x7   :  { %21 = dma.hbm_to_vmem [thread:$0]  %s17_s19, 32, %s19_s23, [#allocation3]  }
   0x8   :  { %s355_s1 = smov [#allocation7]  }
   0x9   :  { %s42_s27 = sshll.u32 %s355_s1, 4  ;;  %s43_s27 = int_to_ptr.vmem [resolvable:$true] %s42_s27 }
   0xa   :  { %45 = dma.hbm_to_vmem [thread:$0]  %s41_s26, 32, %s43_s27, [#allocation6]  }
   0xb   :  { %345 = dma.done.wait [#allocation3], 32  }
   0xc   :  { %346 = vsyncadd [#allocation3], 4294967264 }
   0xd   :  { %347 = dma.done.wait [#allocation6], 8224  }
   0xe   :  { %348 = vsyncadd [#allocation6], 4294959072  ;;  %v90_v0 = vld [vmem:[#allocation5 + $0xf8] sm:$0xff]  ;;  %v88_v1 = vld [vmem:[#allocation5 + $0xe8] sm:$0xff]  ;;  %s356_s0 = smov [#allocation8]   ;;  %s232_s30 = sshll.u32 %s392_s3, 4  ;;  %s233_s30 = int_to_ptr.hbm [resolvable:$true] %s232_s30 }
   0xf   :  { %v122_v2 = vld [vmem:[#allocation5 + $0x1f8] sm:$0xff]  ;;  %174 = vmatpush.msra.mxu2 %v90_v0  ;;  %v120_v3 = vld [vmem:[#allocation5 + $0x1e8] sm:$0xff]  ;;  %v89_v6 = vld [vmem:[#allocation5 + $0xf0] sm:$0xff]  ;;  %s230_s2 = sshll.u32 %s356_s0, 4  ;;  %vm217_vm0 = vcmask 1040384   ;;  %s231_s2 = int_to_ptr.vmem [resolvable:$true] %s230_s2 }
  0x10   :  { %194 = vmatpush.msra.mxu3 %v122_v2  ;;  %v86_v4 = vld [vmem:[#allocation5 + $0xd8] sm:$0xff]  ;;  %v87_v7 = vld [vmem:[#allocation5 + $0xe0] sm:$0xff]  ;;  %v121_v8 = vld [vmem:[#allocation5 + $0x1f0] sm:$0xff]  ;;  %134 = vmatpush.msra.mxu0 %v89_v6 }
  0x11   :  { %v118_v5 = vld [vmem:[#allocation5 + $0x1d8] sm:$0xff]  ;;  %175 = vmatpush.msra.mxu2 %v88_v1  ;;  %v84_v9 = vld [vmem:[#allocation5 + $0xc8] sm:$0xff]  ;;  %154 = vmatpush.msra.mxu1 %v121_v8  ;;  %v85_v11 = vld [vmem:[#allocation5 + $0xd0] sm:$0xff] }
  0x12   :  { %195 = vmatpush.msra.mxu3 %v120_v3  ;;  %v116_v10 = vld [vmem:[#allocation5 + $0x1c8] sm:$0xff]  ;;  %v119_v12 = vld [vmem:[#allocation5 + $0x1e0] sm:$0xff]  ;;  %v82_v13 = vld [vmem:[#allocation5 + $0xb8] sm:$0xff]  ;;  %135 = vmatpush.msra.mxu0 %v87_v7 }
  0x13   :  { %176 = vmatpush.msra.mxu2 %v86_v4  ;;  %v114_v14 = vld [vmem:[#allocation5 + $0x1b8] sm:$0xff]  ;;  %155 = vmatpush.msra.mxu1 %v119_v12  ;;  %v117_v15 = vld [vmem:[#allocation5 + $0x1d0] sm:$0xff]  ;;  %v83_v16 = vld [vmem:[#allocation5 + $0xc0] sm:$0xff]  ;;  %v220_v12 = vlaneseq }
  0x14   :  { %196 = vmatpush.msra.mxu3 %v118_v5  ;;  %v115_v17 = vld [vmem:[#allocation5 + $0x1c0] sm:$0xff]  ;;  %v80_v18 = vld [vmem:[#allocation5 + $0xa8] sm:$0xff]  ;;  %136 = vmatpush.msra.mxu0 %v85_v11  ;;  %v81_v20 = vld [vmem:[#allocation5 + $0xb0] sm:$0xff] }
  0x15   :  { %177 = vmatpush.msra.mxu2 %v84_v9  ;;  %v112_v19 = vld [vmem:[#allocation5 + $0x1a8] sm:$0xff]  ;;  %156 = vmatpush.msra.mxu1 %v117_v15  ;;  %v113_v21 = vld [vmem:[#allocation5 + $0x1b0] sm:$0xff]  ;;  %v78_v22 = vld [vmem:[#allocation5 + $0x98] sm:$0xff]  ;;  %vm222_vm1 = vcmp.lt.s32.totalorder %v220_v12, 256 }
  0x16   :  { %197 = vmatpush.msra.mxu3 %v116_v10  ;;  %137 = vmatpush.msra.mxu0 %v83_v16  ;;  %v110_v23 = vld [vmem:[#allocation5 + $0x198] sm:$0xff]  ;;  %v79_v24 = vld [vmem:[#allocation5 + $0xa0] sm:$0xff]  ;;  %v76_v26 = vld [vmem:[#allocation5 + $0x88] sm:$0xff] }
  0x17   :  { %178 = vmatpush.msra.mxu2 %v82_v13  ;;  %157 = vmatpush.msra.mxu1 %v115_v17  ;;  %v111_v25 = vld [vmem:[#allocation5 + $0x1a0] sm:$0xff]  ;;  %v108_v27 = vld [vmem:[#allocation5 + $0x188] sm:$0xff]  ;;  %v77_v28 = vld [vmem:[#allocation5 + $0x90] sm:$0xff] }
  0x18   :  { %198 = vmatpush.msra.mxu3 %v114_v14  ;;  %138 = vmatpush.msra.mxu0 %v81_v20  ;;  %v109_v29 = vld [vmem:[#allocation5 + $0x190] sm:$0xff]  ;;  %v74_v30 = vld [vmem:[#allocation5 + $0x78] sm:$0xff]  ;;  %v75_v32 = vld [vmem:[#allocation5 + $0x80] sm:$0xff] }
  0x19   :  { %179 = vmatpush.msra.mxu2 %v80_v18  ;;  %158 = vmatpush.msra.mxu1 %v113_v21  ;;  %v106_v31 = vld [vmem:[#allocation5 + $0x178] sm:$0xff]  ;;  %v107_v33 = vld [vmem:[#allocation5 + $0x180] sm:$0xff]  ;;  %v72_v34 = vld [vmem:[#allocation5 + $0x68] sm:$0xff] }
  0x1a   :  { %199 = vmatpush.msra.mxu3 %v112_v19  ;;  %139 = vmatpush.msra.mxu0 %v79_v24  ;;  %v104_v35 = vld [vmem:[#allocation5 + $0x168] sm:$0xff]  ;;  %v73_v36 = vld [vmem:[#allocation5 + $0x70] sm:$0xff]  ;;  %v70_v38 = vld [vmem:[#allocation5 + $0x58] sm:$0xff] }
  0x1b   :  { %180 = vmatpush.msra.mxu2 %v78_v22  ;;  %159 = vmatpush.msra.mxu1 %v111_v25  ;;  %v105_v37 = vld [vmem:[#allocation5 + $0x170] sm:$0xff]  ;;  %v102_v39 = vld [vmem:[#allocation5 + $0x158] sm:$0xff]  ;;  %v71_v40 = vld [vmem:[#allocation5 + $0x60] sm:$0xff] }
  0x1c   :  { %200 = vmatpush.msra.mxu3 %v110_v23  ;;  %140 = vmatpush.msra.mxu0 %v77_v28  ;;  %v103_v41 = vld [vmem:[#allocation5 + $0x160] sm:$0xff]  ;;  %v68_v42 = vld [vmem:[#allocation5 + $0x48] sm:$0xff]  ;;  %v69_v44 = vld [vmem:[#allocation5 + $0x50] sm:$0xff] }
  0x1d   :  { %181 = vmatpush.msra.mxu2 %v76_v26  ;;  %160 = vmatpush.msra.mxu1 %v109_v29  ;;  %v100_v43 = vld [vmem:[#allocation5 + $0x148] sm:$0xff]  ;;  %v101_v45 = vld [vmem:[#allocation5 + $0x150] sm:$0xff]  ;;  %v66_v46 = vld [vmem:[#allocation5 + $0x38] sm:$0xff] }
  0x1e   :  { %201 = vmatpush.msra.mxu3 %v108_v27  ;;  %141 = vmatpush.msra.mxu0 %v75_v32  ;;  %v98_v47 = vld [vmem:[#allocation5 + $0x138] sm:$0xff]  ;;  %v67_v48 = vld [vmem:[#allocation5 + $0x40] sm:$0xff]  ;;  %v64_v50 = vld [vmem:[#allocation5 + $0x28] sm:$0xff] }
  0x1f   :  { %182 = vmatpush.msra.mxu2 %v74_v30  ;;  %161 = vmatpush.msra.mxu1 %v107_v33  ;;  %v99_v49 = vld [vmem:[#allocation5 + $0x140] sm:$0xff]  ;;  %v96_v51 = vld [vmem:[#allocation5 + $0x128] sm:$0xff]  ;;  %v58_v52 = vld [vmem:[#allocation2] sm:$0x3] }
  0x20   :  { %202 = vmatpush.msra.mxu3 %v106_v31  ;;  %142 = vmatpush.msra.mxu0 %v73_v36  ;;  %v65_v53 = vld [vmem:[#allocation5 + $0x30] sm:$0xff]  ;;  %v62_v55 = vld [vmem:[#allocation5 + $0x18] sm:$0xff]  ;;  %v63_v57 = vld [vmem:[#allocation5 + $0x20] sm:$0xff]  ;;  %v125_v60 = vperm.slane %v58_v52, 0  ;;  %v126_v62 = vperm.slane %v58_v52, 1 }
  0x21   :  { %183 = vmatpush.msra.mxu2 %v72_v34  ;;  %162 = vmatpush.msra.mxu1 %v105_v37  ;;  %v97_v54 = vld [vmem:[#allocation5 + $0x130] sm:$0xff]  ;;  %v94_v56 = vld [vmem:[#allocation5 + $0x118] sm:$0xff]  ;;  %v95_v58 = vld [vmem:[#allocation5 + $0x120] sm:$0xff] }
  0x22   :  { %203 = vmatpush.msra.mxu3 %v104_v35  ;;  %143 = vmatpush.msra.mxu0 %v71_v40  ;;  %v60_v59 = vld [vmem:[#allocation5 + $0x8] sm:$0xff]  ;;  %v61_v63 = vld [vmem:[#allocation5 + $0x10] sm:$0xff]  ;;  %v59_v1 = vld [vmem:[#allocation5] sm:$0xff] }
  0x23   :  { %184 = vmatpush.msra.mxu2 %v70_v38  ;;  %163 = vmatpush.msra.mxu1 %v103_v41  ;;  %v92_v61 = vld [vmem:[#allocation5 + $0x108] sm:$0xff]  ;;  %v93_v0 = vld [vmem:[#allocation5 + $0x110] sm:$0xff]  ;;  %v91_v2 = vld [vmem:[#allocation5 + $0x100] sm:$0xff] }
  0x24   :  { %204 = vmatpush.msra.mxu3 %v102_v39  ;;  %144 = vmatpush.msra.mxu0 %v69_v44  ;;  %v123_v3 = vld [vmem:[#allocation7] sm:$0x3] }
  0x25   :  { %185 = vmatpush.msra.mxu2 %v68_v42  ;;  %164 = vmatpush.msra.mxu1 %v101_v45  ;;  %v130_v4 = vperm.slane %v123_v3, 0  ;;  %v131_v5 = vperm.slane %v123_v3, 1 }
  0x26   :  { %205 = vmatpush.msra.mxu3 %v100_v43  ;;  %145 = vmatpush.msra.mxu0 %v67_v48 }
  0x27   :  { %186 = vmatpush.msra.mxu2 %v66_v46  ;;  %165 = vmatpush.msra.mxu1 %v99_v49 }
  0x28   :  { %206 = vmatpush.msra.mxu3 %v98_v47  ;;  %146 = vmatpush.msra.mxu0 %v65_v53 }
  0x29   :  { %187 = vmatpush.msra.mxu2 %v64_v50  ;;  %166 = vmatpush.msra.mxu1 %v97_v54 }
  0x2a   :  { %207 = vmatpush.msra.mxu3 %v96_v51  ;;  %147 = vmatpush.msra.mxu0 %v63_v57 }
  0x2b   :  { %188 = vmatpush.msra.mxu2 %v62_v55  ;;  %167 = vmatpush.msra.mxu1 %v95_v58 }
  0x2c   :  { %208 = vmatpush.msra.mxu3 %v94_v56  ;;  %148 = vmatpush.msra.mxu0 %v61_v63 }
  0x2d   :  { %189 = vmatpush.msra.mxu2 %v60_v59  ;;  %168 = vmatpush.msra.mxu1 %v93_v0 }
  0x2e   :  { %209 = vmatpush.msra.mxu3 %v92_v61  ;;  %190 = vmatmul.f32.vlgmr.msra.gmra.mxu2 %v125_v60 }
  0x2f   :  { %210 = vmatmul.f32.vlgmr.msra.gmra.mxu3 %v126_v62  ;;  %149 = vmatpush.msra.mxu0 %v59_v1 }
  0x30   :  { %169 = vmatpush.msra.mxu1 %v91_v2  ;;  %150 = vmatmul.f32.vlgmr.msra.gmra.mxu0 %v125_v60 }
  0x31   :  { %170 = vmatmul.f32.vlgmr.msra.gmra.mxu1 %v126_v62 }
  0xad   :  { %v151_v6 = vpop.f32.mrf.mxu0 }
  0xae   :  { %v152_v7 = vadd.f32 %v151_v6, %v130_v4  ;;  %v171_v8 = vpop.f32.mrf.mxu1 }
  0xb0   :  { %v172_v14 = vadd.f32 %v171_v8, %v152_v7 }
  0xb1   :  { %v191_v9 = vpop.f32.mrf.mxu2 }
  0xb2   :  { %v211_v10 = vpop.f32.mrf.mxu3  ;;  %v192_v11 = vadd.f32 %v191_v9, %v131_v5 }
  0xb4   :  { %v212_v13 = vadd.f32 %v211_v10, %v192_v11 }
  0xb6   :  { %v216_v15 = vrot.slane %v212_v13, 7 }
  0xb8   :  { %v218_v16 = vsel %vm217_vm0, %v172_v14, %v216_v15 }
  0xb9   :  { %224 = vst.msk [vmem:[#allocation8] sm:$0x3] %vm222_vm1, %v218_v16 }
  0xba   :  { %235 = dma.vmem_to_hbm [thread:$0]  %s231_s2, 32, %s233_s30, [#allocation4]  }
  0xbb   :  { %349 = dma.done.wait [#allocation4], 32  }
  0xbc   :  { %350 = vsyncadd [#allocation4], 4294967264 }
  0xbd   :  { %240 = vsyncpa [#allocation3], 1 }
  0xbe   :  { %241 = vsyncpa [#allocation6], 1 }
  0xbf   :  { %242 = vsyncpa [#allocation4], 1 }

</bundles_post_ra>
